<compile_context>
chip_gen: v5e
topology: v5e:2x2
jax: 0.10.0
libtpu: 0.0.40
codegen_flags: <defaults>
</compile_context>

<pallas_src>
import math
import functools

import jax
import jax.numpy as jnp
from jax.experimental import pallas as pl
from jax.experimental.pallas import tpu as pltpu  # noqa: F401  (TPU backend / params if needed)


def lora_attention_kernel(ids_ref,    # (S*B, 1) int32   token ids, s-major (row r = s*B + b)
                          emb_ref,    # (V, D)  bf16     embedding table (fits VMEM)
                          w_ref,      # (D, D)  bf16     folded w1 @ w2
                          scale_ref,  # (1, D)  f32      gamma / sqrt(D)
                          bias_ref,   # (1, D)  f32      beta  / sqrt(D)
                          keysT_ref,  # (D, K)  bf16     lora keys, pre-transposed
                          out_ref,    # (B, K)  f32      softmax(attn scores)
                          *, batch, seq_len, ln_eps):
    V, D = emb_ref.shape

    # ---- fused embedding gather: one-hot (S*B, V) @ (V, D) on the MXU ------
    ids = ids_ref[...]                                               # (S*B, 1) i32
    vocab_iota = jax.lax.broadcasted_iota(jnp.int32, (batch * seq_len, V), 1)
    onehot = jnp.where(ids == vocab_iota, 1.0, 0.0).astype(jnp.bfloat16)
    gathered = jnp.dot(onehot, emb_ref[...],
                       preferred_element_type=jnp.float32)           # (S*B, D) f32

    # ---- max-pool over the sequence axis (rows are s-major) ----------------
    pooled = gathered[0:batch, :]
    for s in range(1, seq_len):                                      # static python loop
        pooled = jnp.maximum(pooled, gathered[s * batch:(s + 1) * batch, :])

    # ---- LoRA-query MLP: single folded (D, D) matmul, bf16 MXU / f32 acc ---
    y = jnp.dot(pooled.astype(jnp.bfloat16), w_ref[...],
                preferred_element_type=jnp.float32)                  # (B, D)
    y = y * jax.nn.sigmoid(y)                                        # SiLU, f32
    mean = jnp.mean(y, axis=-1, keepdims=True)
    var = jnp.mean(jnp.square(y - mean), axis=-1, keepdims=True)
    # gamma/beta already carry the 1/sqrt(D) attention-score scaling.
    q = (y - mean) * jax.lax.rsqrt(var + ln_eps) * scale_ref[...] + bias_ref[...]

    # ---- scores and exact softmax over the key axis ------------------------
    scores = jnp.dot(q.astype(jnp.bfloat16), keysT_ref[...],
                     preferred_element_type=jnp.float32)             # (B, K)
    m = jnp.max(scores, axis=-1, keepdims=True)
    e = jnp.exp(scores - m)
    out_ref[...] = e / jnp.sum(e, axis=-1, keepdims=True)


def get_lora_attention_pallas(text_ids, emb_bf16, w_folded_bf16, ln_scale,
                              ln_bias, keysT_bf16, *, ln_eps=1e-5):
    """Returns attention weights of shape [B, K, 1] matching the PyTorch module."""
    B, S = text_ids.shape
    V, D = emb_bf16.shape
    K = keysT_bf16.shape[1]

    # s-major flat ids so per-s slices inside the kernel are contiguous,
    # sublane-aligned static slices (B = 8 rows each).
    ids_flat = jnp.transpose(text_ids.astype(jnp.int32)).reshape(S * B, 1)

    kernel = functools.partial(lora_attention_kernel,
                               batch=B, seq_len=S, ln_eps=ln_eps)

    # Single grid step (no grid): all operands (~80 KiB total at demo size)
    # fit comfortably in VMEM, so gather + pool + MLP + softmax run in one
    # invocation instead of a 64-step grid.
    # NOTE(perf): at production vocab the table stays in HBM -> switch to
    # memory_space=pl.ANY + manual double-buffered row-gather DMAs per batch;
    # if K grows to O(100), pad K to 128, mask padded scores to -inf, slice
    # the output in the wrapper; mark a batch grid axis "parallel" for v7x.
    attn = pl.pallas_call(
        kernel,
        out_shape=jax.ShapeDtypeStruct((B, K), jnp.float32),
    )(ids_flat, emb_bf16, w_folded_bf16, ln_scale, ln_bias, keysT_bf16)

    return attn.reshape(B, K, 1)


def get_lora_attention_ref(text_ids, embedding_table, w1, w2, gamma, beta,
                           lora_keys):
    """Pure-JAX f32 reference mirroring the PyTorch get_lora_attention()."""
    D = embedding_table.shape[1]
    embeds = jnp.take(embedding_table, text_ids, axis=0)          # [B, S, D]
    x = jnp.max(embeds, axis=1, keepdims=True)                    # [B, 1, D]
    h = x @ w1
    y = h @ w2
    y = y * jax.nn.sigmoid(y)
    mean = jnp.mean(y, axis=-1, keepdims=True)
    var = jnp.mean(jnp.square(y - mean), axis=-1, keepdims=True)
    q = (y - mean) * jax.lax.rsqrt(var + 1e-5) * gamma + beta      # [B, 1, D]
    keys = jnp.broadcast_to(lora_keys[None], (x.shape[0],) + lora_keys.shape)
    scores = jnp.einsum("bkd,bqd->bkq", keys, q) / math.sqrt(D)    # [B, K, 1]
    return jax.nn.softmax(scores, axis=1)


class ContinualEventExtractionModelPallas:
    """JAX/Pallas port of the LoRA-attention head of ContinualEventExtractionModel."""

    def __init__(self, key, vocab=64, model_dim=128, lora_query_hidden_dim=256,
                 n_frozen_keys=3):
        k0, k1, k2, k3, k4 = jax.random.split(key, 5)
        D, H = model_dim, lora_query_hidden_dim
        self.model_dim = D
        # Frozen base-model embedding table (stand-in for get_input_embeddings()).
        self.embedding_table = jax.random.normal(k0, (vocab, D), jnp.float32) * 0.02
        # lora_query = Linear(D,H,bias=False) -> Linear(H,D,bias=False) -> SiLU -> LayerNorm(D)
        # f32 masters kept for the reference; folded/cast copies fed to the kernel.
        self.w1 = jax.random.normal(k1, (D, H), jnp.float32) / math.sqrt(D)
        self.w2 = jax.random.normal(k2, (H, D), jnp.float32) / math.sqrt(H)
        self.gamma = jnp.ones((D,), jnp.float32)
        self.beta = jnp.zeros((D,), jnp.float32)
        # frozen_lora_keys (n_frozen_keys of shape [1, D]) + trainable_lora_key [1, D]
        frozen = jax.random.uniform(k3, (n_frozen_keys, D), jnp.float32, -1.0, 1.0)
        trainable = jax.random.uniform(k4, (1, D), jnp.float32, -1.0, 1.0)
        self.lora_keys = jnp.concatenate([frozen, trainable], axis=0)   # [K, D]

        # One-time parameter-setup folds/casts (not per-call wrapper ops):
        #  - absorb the 1/sqrt(D) attention-score scaling into gamma/beta,
        #  - fold the two bias-free Linears into one (D, D) matrix (valid while
        #    lora_query is frozen at call time; re-fold after optimizer steps),
        #  - pre-transpose the keys to (D, K),
        #  - cast MXU operands and the embedding table to bf16.
        inv_sqrt_d = 1.0 / math.sqrt(D)
        self.ln_scale = (self.gamma * inv_sqrt_d).reshape(1, D)
        self.ln_bias = (self.beta * inv_sqrt_d).reshape(1, D)
        self.w_folded_bf16 = (self.w1 @ self.w2).astype(jnp.bfloat16)     # (D, D)
        self.keysT_bf16 = jnp.transpose(self.lora_keys).astype(jnp.bfloat16)  # (D, K)
        self.emb_bf16 = self.embedding_table.astype(jnp.bfloat16)

    def get_lora_attention(self, text_ids):
        return get_lora_attention_pallas(
            text_ids, self.emb_bf16, self.w_folded_bf16,
            self.ln_scale, self.ln_bias, self.keysT_bf16)

    def forward(self, text_ids=None, input_ids=None, attention_mask=None,
                labels=None, n_module_to_use=None):
        lora_attn_weights = self.get_lora_attention(text_ids)
        # TODO(synk): the frozen Llama/Qwen base_model forward (full transformer
        # with per-layer LoRA modules, tokenizer, generate, distill loss) has no
        # standalone Pallas equivalent here; we return the shared-attention LoRA
        # routing weights, which is the trainable compute this module adds.
        return lora_attn_weights


if __name__ == "__main__":
    key = jax.random.PRNGKey(0)
    model = ContinualEventExtractionModelPallas(
        key, vocab=64, model_dim=128, lora_query_hidden_dim=256, n_frozen_keys=3)

    # Batch of 8 fills the f32 sublanes / MXU rows.
    B, S = 8, 8
    text_ids = jax.random.randint(jax.random.PRNGKey(1), (B, S), 0, 64)

    out = model.forward(text_ids=text_ids)
    out = jax.block_until_ready(out)

    ref = get_lora_attention_ref(
        text_ids, model.embedding_table, model.w1, model.w2,
        model.gamma, model.beta, model.lora_keys)
    ref = jax.block_until_ready(ref)

    K = model.lora_keys.shape[0]
    assert out.shape == (B, K, 1), out.shape
    # bf16 table / folded bf16 weights vs. f32 reference -> loose tolerance.
    assert jnp.allclose(out, ref, atol=2e-2, rtol=0.0), (
        float(jnp.max(jnp.abs(out - ref))))
    # softmax over key axis sums to 1 (exact divide, f32 rounding only).
    assert jnp.allclose(jnp.sum(out, axis=1), 1.0, atol=1e-4)

    print("KERNEL_OK")
</pallas_src>

<mosaic_0001>
module attributes {stable_mosaic.version = 11 : i64} {
  func.func @lora_attention_kernel(%arg0: memref<64x1xi32, #tpu.memory_space<vmem>>, %arg1: memref<64x128xbf16, #tpu.memory_space<vmem>>, %arg2: memref<128x128xbf16, #tpu.memory_space<vmem>>, %arg3: memref<1x128xf32, #tpu.memory_space<vmem>>, %arg4: memref<1x128xf32, #tpu.memory_space<vmem>>, %arg5: memref<128x4xbf16, #tpu.memory_space<vmem>>, %arg6: memref<8x4xf32, #tpu.memory_space<vmem>>) attributes {dimension_semantics = [], scalar_prefetch = 0 : i64, scratch_operands = 0 : i64, tpu.core_type = #tpu.core_type<tc>} {
    %c0 = arith.constant 0 : index
    %c0_0 = arith.constant 0 : index
    %0 = vector.load %arg0[%c0, %c0_0] : memref<64x1xi32, #tpu.memory_space<vmem>>, vector<64x1xi32>
    %1 = tpu.iota {dimensions = array<i32: 1>} : vector<64x64xi32>
    %2 = vector.broadcast %0 : vector<64x1xi32> to vector<64x64xi32>
    %3 = arith.cmpi eq, %2, %1 : vector<64x64xi32>
    %cst = arith.constant 1.000000e+00 : f32
    %cst_1 = arith.constant 0.000000e+00 : f32
    %4 = vector.broadcast %cst : f32 to vector<64x64xf32>
    %5 = vector.broadcast %cst_1 : f32 to vector<64x64xf32>
    %6 = arith.select %3, %4, %5 : vector<64x64xi1>, vector<64x64xf32>
    %7 = arith.truncf %6 : vector<64x64xf32> to vector<64x64xbf16>
    %c0_2 = arith.constant 0 : index
    %c0_3 = arith.constant 0 : index
    %8 = vector.load %arg1[%c0_2, %c0_3] : memref<64x128xbf16, #tpu.memory_space<vmem>>, vector<64x128xbf16>
    %cst_4 = arith.constant dense<0.000000e+00> : vector<64x128xf32>
    %9 = tpu.matmul %7, %8, %cst_4 {dimension_numbers = #tpu.dot_dimension_numbers<[1], [0], [0], [1], [0, 0, 1, 1], [], []>} : vector<64x64xbf16>, vector<64x128xbf16>, vector<64x128xf32> -> vector<64x128xf32>
    %10 = vector.extract_strided_slice %9 {offsets = [0, 0], sizes = [8, 128], strides = [1, 1]} : vector<64x128xf32> to vector<8x128xf32>
    %11 = vector.extract_strided_slice %9 {offsets = [8, 0], sizes = [8, 128], strides = [1, 1]} : vector<64x128xf32> to vector<8x128xf32>
    %12 = arith.maximumf %10, %11 : vector<8x128xf32>
    %13 = vector.extract_strided_slice %9 {offsets = [16, 0], sizes = [8, 128], strides = [1, 1]} : vector<64x128xf32> to vector<8x128xf32>
    %14 = arith.maximumf %12, %13 : vector<8x128xf32>
    %15 = vector.extract_strided_slice %9 {offsets = [24, 0], sizes = [8, 128], strides = [1, 1]} : vector<64x128xf32> to vector<8x128xf32>
    %16 = arith.maximumf %14, %15 : vector<8x128xf32>
    %17 = vector.extract_strided_slice %9 {offsets = [32, 0], sizes = [8, 128], strides = [1, 1]} : vector<64x128xf32> to vector<8x128xf32>
    %18 = arith.maximumf %16, %17 : vector<8x128xf32>
    %19 = vector.extract_strided_slice %9 {offsets = [40, 0], sizes = [8, 128], strides = [1, 1]} : vector<64x128xf32> to vector<8x128xf32>
    %20 = arith.maximumf %18, %19 : vector<8x128xf32>
    %21 = vector.extract_strided_slice %9 {offsets = [48, 0], sizes = [8, 128], strides = [1, 1]} : vector<64x128xf32> to vector<8x128xf32>
    %22 = arith.maximumf %20, %21 : vector<8x128xf32>
    %23 = vector.extract_strided_slice %9 {offsets = [56, 0], sizes = [8, 128], strides = [1, 1]} : vector<64x128xf32> to vector<8x128xf32>
    %24 = arith.maximumf %22, %23 : vector<8x128xf32>
    %25 = arith.truncf %24 : vector<8x128xf32> to vector<8x128xbf16>
    %c0_5 = arith.constant 0 : index
    %c0_6 = arith.constant 0 : index
    %26 = vector.load %arg2[%c0_5, %c0_6] : memref<128x128xbf16, #tpu.memory_space<vmem>>, vector<128x128xbf16>
    %cst_7 = arith.constant dense<0.000000e+00> : vector<8x128xf32>
    %27 = tpu.matmul %25, %26, %cst_7 {dimension_numbers = #tpu.dot_dimension_numbers<[1], [0], [0], [1], [0, 0, 1, 1], [], []>} : vector<8x128xbf16>, vector<128x128xbf16>, vector<8x128xf32> -> vector<8x128xf32>
    %28 = arith.negf %27 : vector<8x128xf32>
    %29 = math.exp %28 : vector<8x128xf32>
    %cst_8 = arith.constant 1.000000e+00 : f32
    %30 = vector.broadcast %cst_8 : f32 to vector<8x128xf32>
    %31 = arith.addf %30, %29 : vector<8x128xf32>
    %32 = arith.divf %30, %31 : vector<8x128xf32>
    %33 = arith.mulf %27, %32 : vector<8x128xf32>
    %cst_9 = arith.constant dense<0.000000e+00> : vector<8xf32>
    %34 = vector.multi_reduction <add>, %33, %cst_9 [1] : vector<8x128xf32> to vector<8xf32>
    %35 = vector.shape_cast %34 : vector<8xf32> to vector<8x1xf32>
    %cst_10 = arith.constant 1.280000e+02 : f32
    %36 = vector.broadcast %cst_10 : f32 to vector<8x1xf32>
    %37 = arith.divf %35, %36 : vector<8x1xf32>
    %38 = vector.broadcast %37 : vector<8x1xf32> to vector<8x128xf32>
    %39 = arith.subf %33, %38 : vector<8x128xf32>
    %40 = arith.mulf %39, %39 : vector<8x128xf32>
    %cst_11 = arith.constant dense<0.000000e+00> : vector<8xf32>
    %41 = vector.multi_reduction <add>, %40, %cst_11 [1] : vector<8x128xf32> to vector<8xf32>
    %42 = vector.shape_cast %41 : vector<8xf32> to vector<8x1xf32>
    %cst_12 = arith.constant 1.280000e+02 : f32
    %43 = vector.broadcast %cst_12 : f32 to vector<8x1xf32>
    %44 = arith.divf %42, %43 : vector<8x1xf32>
    %45 = vector.broadcast %37 : vector<8x1xf32> to vector<8x128xf32>
    %46 = arith.subf %33, %45 : vector<8x128xf32>
    %cst_13 = arith.constant 9.99999974E-6 : f32
    %47 = vector.broadcast %cst_13 : f32 to vector<8x1xf32>
    %48 = arith.addf %44, %47 : vector<8x1xf32>
    %49 = math.rsqrt %48 : vector<8x1xf32>
    %50 = vector.broadcast %49 : vector<8x1xf32> to vector<8x128xf32>
    %51 = arith.mulf %46, %50 : vector<8x128xf32>
    %c0_14 = arith.constant 0 : index
    %c0_15 = arith.constant 0 : index
    %52 = vector.load %arg3[%c0_14, %c0_15] : memref<1x128xf32, #tpu.memory_space<vmem>>, vector<1x128xf32>
    %53 = vector.broadcast %52 : vector<1x128xf32> to vector<8x128xf32>
    %54 = arith.mulf %51, %53 : vector<8x128xf32>
    %c0_16 = arith.constant 0 : index
    %c0_17 = arith.constant 0 : index
    %55 = vector.load %arg4[%c0_16, %c0_17] : memref<1x128xf32, #tpu.memory_space<vmem>>, vector<1x128xf32>
    %56 = vector.broadcast %55 : vector<1x128xf32> to vector<8x128xf32>
    %57 = arith.addf %54, %56 : vector<8x128xf32>
    %58 = arith.truncf %57 : vector<8x128xf32> to vector<8x128xbf16>
    %c0_18 = arith.constant 0 : index
    %c0_19 = arith.constant 0 : index
    %59 = vector.load %arg5[%c0_18, %c0_19] : memref<128x4xbf16, #tpu.memory_space<vmem>>, vector<128x4xbf16>
    %cst_20 = arith.constant dense<0.000000e+00> : vector<8x4xf32>
    %60 = tpu.matmul %58, %59, %cst_20 {dimension_numbers = #tpu.dot_dimension_numbers<[1], [0], [0], [1], [0, 0, 1, 1], [], []>} : vector<8x128xbf16>, vector<128x4xbf16>, vector<8x4xf32> -> vector<8x4xf32>
    %cst_21 = arith.constant dense<0xFF800000> : vector<8xf32>
    %61 = vector.multi_reduction <maximumf>, %60, %cst_21 [1] : vector<8x4xf32> to vector<8xf32>
    %62 = vector.shape_cast %61 : vector<8xf32> to vector<8x1xf32>
    %63 = vector.broadcast %62 : vector<8x1xf32> to vector<8x4xf32>
    %64 = arith.subf %60, %63 : vector<8x4xf32>
    %65 = math.exp %64 : vector<8x4xf32>
    %cst_22 = arith.constant dense<0.000000e+00> : vector<8xf32>
    %66 = vector.multi_reduction <add>, %65, %cst_22 [1] : vector<8x4xf32> to vector<8xf32>
    %67 = vector.shape_cast %66 : vector<8xf32> to vector<8x1xf32>
    %68 = vector.broadcast %67 : vector<8x1xf32> to vector<8x4xf32>
    %69 = arith.divf %65, %68 : vector<8x4xf32>
    %c0_23 = arith.constant 0 : index
    %c0_24 = arith.constant 0 : index
    %70 = vector.load %arg6[%c0_23, %c0_24] : memref<8x4xf32, #tpu.memory_space<vmem>>, vector<8x4xf32>
    tpu.vector_store %arg6[%c0_23, %c0_24], %69 {strides = array<i32>} : memref<8x4xf32, #tpu.memory_space<vmem>>, vector<8x4xf32>,
    return
  }
}

</mosaic_0001>

<bundles_post_ra>
// kernel: tpu_custom_call.1
= control target key start
LH: loop header
LB: loop body
LE: loop exit
PB: predicated region body
PF: predicated region fallthrough
CT: control target
= control target key end

     0   :  { %v531_v0 = vmov 0   ;;  %v32_v13 = vlaneseq  ;;  %vm110_vm4 = vcmask 523264   ;;  %v532_v20 = vmov 0.0   ;;  %s669_s0 = inlined_call_operand.vmem [shape: s32[64,1], index: 0, kind: input, shape index: {}]   ;;  %s670_s1 = inlined_call_operand.vmem [shape: bf16[64,128], index: 1, kind: input, shape index: {}]   ;;  %s671_s2 = inlined_call_operand.vmem [shape: bf16[128,128], index: 2, kind: input, shape index: {}]   ;;  %s672_s5 = inlined_call_operand.vmem [shape: bf16[128,4], index: 5, kind: input, shape index: {}]   ;;  %s673_s3 = inlined_call_operand.vmem [shape: f32[1,128], index: 3, kind: input, shape index: {}]   ;;  %s674_s4 = inlined_call_operand.vmem [shape: f32[1,128], index: 4, kind: input, shape index: {}]   ;;  %s675_s6 = inlined_call_operand.vmem [shape: f32[8,4], index: 6, kind: output, shape index: {}]  }
   0x1   :  { %515 = vset.pattern.permute.xlu1 %v531_v0  ;;  %514 = vset.pattern.permute.xlu0 %v531_v0  ;;  %v28_v1 = vld [vmem:[%s669_s0 + $0x20] sm:$0xff]  ;;  %v26_v3 = vld [vmem:[%s669_s0 + $0x10] sm:$0xff]  ;;  %v490_v4 = vld [vmem:[%s670_s1 + $0x18] sm:$0xff] }
   0x2   :  { %v24_v2 = vld [vmem:[%s669_s0] sm:$0xff]  ;;  %47 = vperm.xlu1 %515, %v28_v1   ;;  %516 = vset.pattern.permute.xlu2 %v531_v0  ;;  %v29_v5 = vld [vmem:[%s669_s0 + $0x28] sm:$0xff]  ;;  %v27_v7 = vld [vmem:[%s669_s0 + $0x18] sm:$0xff]  ;;  %v33_v16 = vand.u32 127, %v32_v13 }
   0x3   :  { %35 = vperm.xlu0 %514, %v24_v2   ;;  %41 = vperm.xlu2 %516, %v26_v3   ;;  %v25_v6 = vld [vmem:[%s669_s0 + $0x8] sm:$0xff]  ;;  %v31_v8 = vld [vmem:[%s669_s0 + $0x38] sm:$0xff]  ;;  %v30_v9 = vld [vmem:[%s669_s0 + $0x30] sm:$0xff] }
   0x4   :  { %127 = vmatpush.bf16.msra.mxu0 %v490_v4  ;;  %507 = vmatpush.bf16.msra.mxu3 %v490_v4  ;;  %v489_v10 = vld [vmem:[%s670_s1 + $0x10] sm:$0xff]  ;;  %v488_v11 = vld [vmem:[%s670_s1 + $0x8] sm:$0xff]  ;;  %v487_v12 = vld [vmem:[%s670_s1] sm:$0xff] }
   0x5   :  { %v498_v36 = vld [vmem:[%s671_s2 + $0x38] sm:$0xff]  ;;  %v497_v37 = vld [vmem:[%s671_s2 + $0x30] sm:$0xff]  ;;  %v496_v38 = vld [vmem:[%s671_s2 + $0x28] sm:$0xff] }
   0x6   :  { %224 = vmatpush.bf16.msra.mxu1 %v498_v36  ;;  %v495_v39 = vld [vmem:[%s671_s2 + $0x20] sm:$0xff]  ;;  %v494_v40 = vld [vmem:[%s671_s2 + $0x18] sm:$0xff]  ;;  %v493_v41 = vld [vmem:[%s671_s2 + $0x10] sm:$0xff] }
   0x7   :  { %v492_v42 = vld [vmem:[%s671_s2 + $0x8] sm:$0xff]  ;;  %v491_v44 = vld [vmem:[%s671_s2] sm:$0xff]  ;;  %v506_v13 = vld [vmem:[%s672_s5 + $0x38] sm:$0xff] }
   0x8   :  { %128 = vmatpush.bf16.msra.mxu0 %v489_v10  ;;  %508 = vmatpush.bf16.msra.mxu3 %v489_v10 }
   0x9   :  { %359 = vmatpush.bf16.msra.mxu2 %v506_v13 }
   0xa   :  { %50 = vperm.xlu1 %515, %v29_v5   ;;  %225 = vmatpush.bf16.msra.mxu1 %v497_v37 }
   0xb   :  { %38 = vperm.xlu0 %514, %v25_v6   ;;  %44 = vperm.xlu2 %516, %v27_v7  }
   0xc   :  { %129 = vmatpush.bf16.msra.mxu0 %v488_v11  ;;  %509 = vmatpush.bf16.msra.mxu3 %v488_v11 }
   0xe   :  { %226 = vmatpush.bf16.msra.mxu1 %v496_v38 }
  0x10   :  { %130 = vmatpush.bf16.msra.mxu0 %v487_v12  ;;  %510 = vmatpush.bf16.msra.mxu3 %v487_v12  ;;  %v533_v12 = vmov 128.0  }
  0x12   :  { %56 = vperm.xlu1 %515, %v31_v8   ;;  %227 = vmatpush.bf16.msra.mxu1 %v495_v39 }
  0x13   :  { %53 = vperm.xlu0 %514, %v30_v9  }
  0x16   :  { %228 = vmatpush.bf16.msra.mxu1 %v494_v40  ;;  %v517_v40 = vld [vmem:[%s673_s3] ss:$0 sm:$0xff] }
  0x1a   :  { %229 = vmatpush.bf16.msra.mxu1 %v493_v41 }
  0x1e   :  { %230 = vmatpush.bf16.msra.mxu1 %v492_v42 }
  0x22   :  { %231 = vmatpush.bf16.msra.mxu1 %v491_v44 }
  0x5d   :  { %v42_v17 = vpop.permute.xlu2 %41 }
  0x5e   :  { %vm60_vm5 = vcmp.eq.s32.totalorder %v42_v17, %v33_v16 }
  0x5f   :  { %v68_v30 = vsel %vm60_vm5, 1.0, %v532_v20 }
  0x65   :  { %v45_v27 = vpop.permute.xlu2 %44 }
  0x66   :  { %vm61_vm7 = vcmp.eq.s32.totalorder %v45_v27, %v33_v16  ;;  %v502_v27 = vld [vmem:[%s672_s5 + $0x18] sm:$0xff] }
  0x67   :  { %v69_v32 = vsel %vm61_vm7, 1.0, %v532_v20 }
  0x68   :  { %v75_v34 = vpack.c.bf16 %v69_v32, %v68_v30  ;;  %v499_v30 = vld [vmem:[%s672_s5] sm:$0xff] }
  0x74   :  { %v48_v14 = vpop.permute.xlu1 %47 }
  0x75   :  { %v36_v15 = vpop.permute.xlu0 %35  ;;  %vm62_vm0 = vcmp.eq.s32.totalorder %v48_v14, %v33_v16 }
  0x76   :  { %vm58_vm1 = vcmp.eq.s32.totalorder %v36_v15, %v33_v16  ;;  %v70_v21 = vsel %vm62_vm0, 1.0, %v532_v20 }
  0x77   :  { %v66_v22 = vsel %vm58_vm1, 1.0, %v532_v20  ;;  %vm372_vm1 = vcmask 31744  }
  0x7c   :  { %v51_v18 = vpop.permute.xlu1 %50 }
  0x7d   :  { %v39_v19 = vpop.permute.xlu0 %38  ;;  %vm63_vm2 = vcmp.eq.s32.totalorder %v51_v18, %v33_v16 }
  0x7e   :  { %vm59_vm3 = vcmp.eq.s32.totalorder %v39_v19, %v33_v16  ;;  %v71_v23 = vsel %vm63_vm2, 1.0, %v532_v20 }
  0x7f   :  { %v67_v24 = vsel %vm59_vm3, 1.0, %v532_v20  ;;  %v76_v25 = vpack.c.bf16 %v71_v23, %v70_v21 }
  0x80   :  { %v74_v26 = vpack.c.bf16 %v67_v24, %v66_v22  ;;  %v505_v24 = vld [vmem:[%s672_s5 + $0x30] sm:$0xff] }
  0x81   :  { %420 = vmatmul.msk.bf16.vlgmr.msra.gmra.mxu3 %vm110_vm4, %v76_v25  ;;  %360 = vmatpush.bf16.msra.mxu2 %v505_v24  ;;  %v504_v25 = vld [vmem:[%s672_s5 + $0x28] sm:$0xff] }
  0x82   :  { %418 = vmatmul.msk.bf16.vlgmr.msra.gmra.mxu0 %vm110_vm4, %v74_v26  ;;  %v503_v26 = vld [vmem:[%s672_s5 + $0x20] sm:$0xff] }
  0x84   :  { %v57_v28 = vpop.permute.xlu1 %56 }
  0x85   :  { %v54_v29 = vpop.permute.xlu0 %53  ;;  %vm65_vm6 = vcmp.eq.s32.totalorder %v57_v28, %v33_v16  ;;  %361 = vmatpush.bf16.msra.mxu2 %v504_v25  ;;  %v501_v28 = vld [vmem:[%s672_s5 + $0x10] sm:$0xff] }
  0x86   :  { %vm64_vm8 = vcmp.eq.s32.totalorder %v54_v29, %v33_v16  ;;  %v73_v31 = vsel %vm65_vm6, 1.0, %v532_v20  ;;  %v500_v29 = vld [vmem:[%s672_s5 + $0x8] sm:$0xff] }
  0x87   :  { %v72_v33 = vsel %vm64_vm8, 1.0, %v532_v20 }
  0x88   :  { %v77_v35 = vpack.c.bf16 %v73_v31, %v72_v33 }
  0x89   :  { %362 = vmatpush.bf16.msra.mxu2 %v503_v26 }
  0x8d   :  { %363 = vmatpush.bf16.msra.mxu2 %v502_v27 }
  0x91   :  { %421 = vmatmul.msk.bf16.gmra.mxu3 %vm110_vm4, %v77_v35  ;;  %364 = vmatpush.bf16.msra.mxu2 %v501_v28 }
  0x92   :  { %419 = vmatmul.msk.bf16.gmra.mxu0 %vm110_vm4, %v75_v34 }
  0x95   :  { %365 = vmatpush.bf16.msra.mxu2 %v500_v29 }
  0x99   :  { %366 = vmatpush.bf16.msra.mxu2 %v499_v30 }
  0xff   :  { %v132_v43 = vpop.f32.mrf.mxu0 }
 0x104   :  { %v142_v45 = vpop.f32.mrf.mxu3 }
 0x107   :  { %v134_v46 = vpop.f32.mrf.mxu0 }
 0x108   :  { %v152_v49 = vmax.f32 %v132_v43, %v134_v46  ;;  %v518_v43 = vld [vmem:[%s674_s4] ss:$0 sm:$0xff] }
 0x10c   :  { %v144_v47 = vpop.f32.mrf.mxu3 }
 0x10f   :  { %v137_v48 = vpop.f32.mrf.mxu0 }
 0x110   :  { %v153_v51 = vmax.f32 %v152_v49, %v137_v48 }
 0x114   :  { %v147_v50 = vpop.f32.mrf.mxu3 }
 0x117   :  { %v139_v52 = vpop.f32.mrf.mxu0 }
 0x118   :  { %v154_v53 = vmax.f32 %v153_v51, %v139_v52 }
 0x11a   :  { %v155_v54 = vmax.f32 %v154_v53, %v142_v45 }
 0x11c   :  { %v156_v55 = vmax.f32 %v155_v54, %v144_v47  ;;  %v149_v57 = vpop.f32.mrf.mxu3 }
 0x11e   :  { %v157_v56 = vmax.f32 %v156_v55, %v147_v50 }
 0x120   :  { %v158_v58 = vmax.f32 %v157_v56, %v149_v57 }
 0x122   :  { %v159_v59 = vpack.c.bf16 %v158_v58, %v158_v58 }
 0x124   :  { %232 = vmatmul.bf16.vlgmr.msra.gmra.mxu1 %v159_v59 }
 0x1a1   :  { %v233_v60 = vpop.f32.mrf.mxu1 }
 0x1a2   :  { %v454_v61 = vmul.f32 -1.442695, %v233_v60 }
 0x1a4   :  { %519 = vpow2.f32 %v454_v61 }
 0x1a9   :  { %v235_v62 = vpop.f32.mrf.mxu1 }
 0x1aa   :  { %v520_v63 = vpop.eup %519 }
 0x1ab   :  { %v240_v0 = vadd.f32 1.0, %v520_v63 }
 0x1ad   :  { %521 = vrcp.f32 %v240_v0  ;;  %v252_v4 = vand.u32 2147483648, %v240_v0  ;;  %v250_v6 = vand.u32 2147483647, %v240_v0  ;;  %vm246_vm10 = vweird.f32 %v240_v0 }
 0x1ae   :  { %523 = vrcp.f32 %v533_v12 }
 0x1af   :  { %v253_v8 = vor.u32 1.1754944e-38, %v252_v4  ;;  %vm251_vm12 = vcmp.eq.f32.partialorder %v250_v6, 8.507059e+37 }
 0x1b3   :  { %v522_v1 = vpop.eup %521 }
 0x1b4   :  { %v242_v2 = vmul.f32 %v522_v1, %v240_v0  ;;  %vm247_vm9 = vweird.f32 %v522_v1  ;;  %v524_v14 = vpop.eup %523 }
 0x1b5   :  { %vm248_vm11 = vmor %vm246_vm10, %vm247_vm9  ;;  %v260_v15 = vmul.f32 128.0, %v524_v14  ;;  %vm264_vm13 = vweird.f32 %v524_v14 }
 0x1b6   :  { %v243_v3 = vsub.f32 1.0, %v242_v2 }
 0x1b7   :  { %v261_v16 = vsub.f32 1.0, %v260_v15 }
 0x1b8   :  { %v244_v5 = vmul.f32 %v522_v1, %v243_v3 }
 0x1b9   :  { %v262_v17 = vmul.f32 %v524_v14, %v261_v16 }
 0x1ba   :  { %v245_v7 = vadd.f32 %v522_v1, %v244_v5 }
 0x1bb   :  { %v263_v18 = vadd.f32 %v524_v14, %v262_v17 }
 0x1bc   :  { %v249_v9 = vsel %vm248_vm11, %v522_v1, %v245_v7 }
 0x1bd   :  { %v254_v10 = vsel %vm251_vm12, %v253_v8, %v249_v9  ;;  %v265_v19 = vsel %vm264_vm13, %v524_v14, %v263_v18 }
 0x1be   :  { %v256_v11 = vmul.f32 %v254_v10, %v233_v60 }
 0x1c0   :  { %257 = vadd.xlane.f32.xlu2 %v256_v11 }
 0x233   :  { %v258_v20 = vpop.xlane.xlu2 %257 }
 0x234   :  { %v266_v21 = vmul.f32 %v265_v19, %v258_v20 }
 0x236   :  { %v267_v22 = vsub.f32 %v256_v11, %v266_v21 }
 0x238   :  { %v268_v23 = vmul.f32 %v267_v22, %v267_v22 }
 0x23a   :  { %269 = vadd.xlane.f32.xlu0 %v268_v23 }
 0x2ad   :  { %v270_v31 = vpop.xlane.xlu0 %269 }
 0x2ae   :  { %v271_v32 = vmul.f32 %v270_v31, %v265_v19 }
 0x2b0   :  { %v272_v33 = vadd.f32 1e-05, %v271_v32 }
 0x2b2   :  { %525 = vrsqrt.f32 %v272_v33  ;;  %vm279_vm15 = vweird.f32 %v272_v33 }
 0x2b8   :  { %v526_v34 = vpop.eup %525 }
 0x2b9   :  { %v274_v35 = vmul.f32 %v526_v34, %v272_v33  ;;  %vm280_vm14 = vweird.f32 %v526_v34 }
 0x2ba   :  { %vm281_vm0 = vmor %vm279_vm15, %vm280_vm14 }
 0x2bb   :  { %v275_v36 = vmul.f32 %v526_v34, %v274_v35 }
 0x2bd   :  { %v276_v37 = vmul.f32 0.5, %v275_v36 }
 0x2bf   :  { %v277_v38 = vsub.f32 1.5, %v276_v37 }
 0x2c1   :  { %v278_v39 = vmul.f32 %v526_v34, %v277_v38 }
 0x2c3   :  { %v282_v41 = vsel %vm281_vm0, %v526_v34, %v278_v39 }
 0x2c4   :  { %v283_v42 = vmul.f32 %v282_v41, %v267_v22 }
 0x2c6   :  { %v288_v44 = vmul.f32 %v517_v40, %v283_v42 }
 0x2c8   :  { %v293_v45 = vadd.f32 %v518_v43, %v288_v44 }
 0x2ca   :  { %v294_v46 = vpack.c.bf16 %v293_v45, %v293_v45 }
 0x2cc   :  { %367 = vmatmul.bf16.vlgmr.msra.gmra.mxu2 %v294_v46 }
 0x34f   :  { %v368_v47 = vpop.f32.mrf.mxu2 }
 0x350   :  { %v373_v48 = vsel %vm372_vm1, %v368_v47, -inf }
 0x351   :  { %374 = vmax.xlane.f32.xlu1 %v373_v48 }
 0x357   :  { %v370_v49 = vpop.f32.mrf.mxu2 }
 0x3c4   :  { %v375_v50 = vpop.xlane.xlu1 %374 }
 0x3c5   :  { %v376_v51 = vsub.f32 %v368_v47, %v375_v50 }
 0x3c7   :  { %v377_v52 = vmul.f32 1.442695, %v376_v51 }
 0x3c9   :  { %527 = vpow2.f32 %v377_v52 }
 0x3cf   :  { %v528_v53 = vpop.eup %527 }
 0x3d0   :  { %v379_v54 = vsel %vm372_vm1, %v528_v53, 0.0 }
 0x3d1   :  { %380 = vadd.xlane.f32.xlu2 %v379_v54 }
 0x444   :  { %v381_v55 = vpop.xlane.xlu2 %380 }
 0x445   :  { %529 = vrcp.f32 %v381_v55  ;;  %v393_v59 = vand.u32 2147483648, %v381_v55  ;;  %v391_v61 = vand.u32 2147483647, %v381_v55  ;;  %vm387_vm3 = vweird.f32 %v381_v55 }
 0x447   :  { %v394_v63 = vor.u32 1.1754944e-38, %v393_v59  ;;  %vm392_vm5 = vcmp.eq.f32.partialorder %v391_v61, 8.507059e+37 }
 0x44b   :  { %v530_v56 = vpop.eup %529 }
 0x44c   :  { %v383_v57 = vmul.f32 %v530_v56, %v381_v55  ;;  %vm388_vm2 = vweird.f32 %v530_v56 }
 0x44d   :  { %vm389_vm4 = vmor %vm387_vm3, %vm388_vm2 }
 0x44e   :  { %v384_v58 = vsub.f32 1.0, %v383_v57 }
 0x450   :  { %v385_v60 = vmul.f32 %v530_v56, %v384_v58 }
 0x452   :  { %v386_v62 = vadd.f32 %v530_v56, %v385_v60 }
 0x454   :  { %v390_v0 = vsel %vm389_vm4, %v530_v56, %v386_v62 }
 0x455   :  { %v395_v1 = vsel %vm392_vm5, %v394_v63, %v390_v0 }
 0x456   :  { %v396_v2 = vmul.f32 %v528_v53, %v395_v1 }
 0x458   :  { %397 = vst.msk [vmem:[%s675_s6] sm:$0xff] %vm372_vm1, %v396_v2 }

</bundles_post_ra>
